<compile_context>
chip_gen: v5e
topology: v5e:2x2
jax: 0.10.0
libtpu: 0.0.40
codegen_flags: <defaults>
</compile_context>

<pallas_src>
import functools

import jax
import jax.numpy as jnp
from jax import lax
from jax.experimental import pallas as pl
from jax.experimental.pallas import tpu as pltpu


def _tile_budget_bytes():
    """Per-input-tile byte budget (two in-flight buffers of this + tiny f32 acc)."""
    budget = 6 * 1024 * 1024  # safe under v5e's 16 MiB scoped-VMEM default (2 bufs = 12 MiB)
    try:
        info = pltpu.get_tpu_info()
        version = "".join(
            str(getattr(info, name, ""))
            for name in ("chip_version", "version", "chip_name", "name")
        ).lower()
        if ("v6" in version) or ("v7" in version) or ("6e" in version) or ("7x" in version):
            budget = 12 * 1024 * 1024  # v6e/v7x scoped default is 32 MiB; 2x12 + acc fits
    except Exception:
        pass  # conservative default is still ~85%+ of the mem-bound roofline
    return budget


def _gap_kernel(x_ref, o_ref, acc_ref, *, ts, s_total, inv_s, need_mask):
    """One (tb, ts, td) tile: accumulate token sums; finalize on the last S-tile."""
    s = pl.program_id(2)
    s_last = pl.num_programs(2) - 1

    @pl.when(s == 0)
    def _():
        acc_ref[...] = jnp.zeros_like(acc_ref)

    if need_mask:
        # The padding mask only matters on the final, partial S-tile; gate it so
        # the steady-state path is just (cast + add) and the VPU never becomes
        # the binding slot (bf16 on v7x at 3.2 TB/s is close already).
        @pl.when(s < s_last)
        def _():
            acc_ref[...] += jnp.sum(x_ref[...].astype(jnp.float32), axis=1)

        @pl.when(s == s_last)
        def _():
            x = x_ref[...].astype(jnp.float32)
            row = s * ts + lax.broadcasted_iota(jnp.int32, x.shape, dimension=1)
            x = jnp.where(row < s_total, x, 0.0)
            acc_ref[...] += jnp.sum(x, axis=1)
    else:
        # TODO(synk): if v7x bf16 profiling still shows the VALU slot saturating,
        # move this reduction onto the MXU via lax.dot_general against a ones
        # (or mask) vector with preferred_element_type=f32.
        acc_ref[...] += jnp.sum(x_ref[...].astype(jnp.float32), axis=1)

    @pl.when(s == s_last)
    def _():
        # Single multiply by the precomputed 1/S, only in the epilogue.
        o_ref[...] = (acc_ref[...] * inv_s).astype(o_ref.dtype)


def _pick_tiles(B, S, D, itemsize, budget):
    """Pick (tb, ts, td) under the byte budget, respecting the (8, 128) layout rule."""
    # Batch tile: full batch if small (block == full dim is always legal),
    # else 8 rows so the (tb, td) output block keeps an 8-aligned sublane dim.
    tb = B if B <= 8 else 8
    nb = -(-B // tb)

    # Channel tile: full D by default.  Split into 128-aligned halves when the
    # batch axis collapses to a single grid tile (gives v7x's second TensorCore
    # a parallel tile), and keep halving very wide D until a minimal 8-row
    # S-tile fits the budget (prevents the old max(8, ...) budget overshoot).
    td = D
    if nb == 1 and D % 256 == 0:
        td = D // 2
    while td % 256 == 0 and tb * 8 * td * itemsize > budget:
        td //= 2

    # Sequence tile: as many rows as the budget allows, rounded down to a
    # multiple of 8; prefer a nearby size that divides S exactly so there is no
    # masked last tile and no short partial grid step.
    max_ts = budget // (tb * td * itemsize)
    if max_ts >= S:
        ts = S
    else:
        ts = max(8, (max_ts // 8) * 8)
        lo = max(8, (ts * 3) // 4)  # accept up to ~25% smaller tiles for exact division
        for cand in range(ts, lo - 1, -8):
            if S % cand == 0:
                ts = cand
                break
    return tb, ts, td


def global_average_pooling(x):
    """Mean over dim=1 of a (B, S, D) array, computed in a Pallas TPU kernel."""
    B, S, D = x.shape
    itemsize = jnp.dtype(x.dtype).itemsize
    tb, ts, td = _pick_tiles(B, S, D, itemsize, _tile_budget_bytes())
    need_mask = (S % ts) != 0

    # Batch and D tiles first (parallel), S reduction axis last (arbitrary).
    grid = (pl.cdiv(B, tb), D // td, pl.cdiv(S, ts))

    kernel = functools.partial(
        _gap_kernel, ts=ts, s_total=S, inv_s=1.0 / float(S), need_mask=need_mask,
    )

    # TODO(synk): for deployments with D < 128 the (tb, td) output block uses
    # masked stores; a lane-dense (1, tb*D) output layout would remove them,
    # but the store is ~1/S of the traffic so the reshape is not worth it.
    return pl.pallas_call(
        kernel,
        out_shape=jax.ShapeDtypeStruct((B, D), x.dtype),
        grid=grid,
        in_specs=[pl.BlockSpec((tb, ts, td), lambda b, d, s: (b, s, d))],
        out_specs=pl.BlockSpec((tb, td), lambda b, d, s: (b, d)),
        scratch_shapes=[pltpu.VMEM((tb, td), jnp.float32)],
        compiler_params=pltpu.CompilerParams(
            dimension_semantics=("parallel", "parallel", "arbitrary"),
        ),
        cost_estimate=pl.CostEstimate(
            flops=B * S * D,
            transcendentals=0,
            bytes_accessed=B * S * D * itemsize + B * D * itemsize,
        ),
    )(x)


if __name__ == "__main__":
    key = jax.random.PRNGKey(0)
    # MLP-Mixer token stream: batch=2, num_patches=8, hidden_dim=32
    x = jax.random.normal(key, (2, 8, 32), dtype=jnp.float32)

    out = jax.block_until_ready(global_average_pooling(x))

    ref = jnp.mean(x, axis=1)
    assert out.shape == ref.shape, (out.shape, ref.shape)
    assert jnp.allclose(out, ref, atol=1e-5, rtol=1e-5), float(jnp.max(jnp.abs(out - ref)))

    print("KERNEL_OK")
</pallas_src>

<mosaic_0001>
module attributes {stable_mosaic.version = 11 : i64} {
  func.func @_gap_kernel(%arg0: i32, %arg1: i32, %arg2: i32, %arg3: memref<2x8x32xf32, #tpu.memory_space<vmem>>, %arg4: memref<2x32xf32, #tpu.memory_space<vmem>>, %arg5: memref<2x32xf32, #tpu.memory_space<vmem>>) attributes {dimension_semantics = [#tpu.dimension_semantics<parallel>, #tpu.dimension_semantics<parallel>, #tpu.dimension_semantics<arbitrary>], iteration_bounds = array<i64: 1, 1, 1>, scalar_prefetch = 0 : i64, scratch_operands = 1 : i64, tpu.core_type = #tpu.core_type<tc>, window_params = [{transform_indices = @transform_0, window_bounds = array<i64: 2, 8, 32>}, {transform_indices = @transform_1, window_bounds = array<i64: 2, 32>}]} {
    %c0_i32 = arith.constant 0 : i32
    %0 = arith.cmpi eq, %arg2, %c0_i32 : i32
    %1 = arith.extui %0 : i1 to i32
    %c0_i32_0 = arith.constant 0 : i32
    %2 = arith.cmpi ne, %1, %c0_i32_0 : i32
    scf.if %2 {
      %cst_9 = arith.constant 0.000000e+00 : f32
      %11 = vector.broadcast %cst_9 : f32 to vector<2x32xf32>
      %c0_10 = arith.constant 0 : index
      %c0_11 = arith.constant 0 : index
      %12 = vector.load %arg5[%c0_10, %c0_11] : memref<2x32xf32, #tpu.memory_space<vmem>>, vector<2x32xf32>
      tpu.vector_store %arg5[%c0_10, %c0_11], %11 {strides = array<i32>} : memref<2x32xf32, #tpu.memory_space<vmem>>, vector<2x32xf32>,
    } else {
    }
    %c0 = arith.constant 0 : index
    %c0_1 = arith.constant 0 : index
    %3 = vector.load %arg5[%c0, %c0_1] : memref<2x32xf32, #tpu.memory_space<vmem>>, vector<2x32xf32>
    %c0_2 = arith.constant 0 : index
    %c0_3 = arith.constant 0 : index
    %c0_4 = arith.constant 0 : index
    %4 = vector.load %arg3[%c0_2, %c0_3, %c0_4] : memref<2x8x32xf32, #tpu.memory_space<vmem>>, vector<2x8x32xf32>
    %cst = arith.constant dense<0.000000e+00> : vector<2x32xf32>
    %5 = vector.multi_reduction <add>, %4, %cst [1] : vector<2x8x32xf32> to vector<2x32xf32>
    %6 = arith.addf %3, %5 : vector<2x32xf32>
    %c0_5 = arith.constant 0 : index
    %c0_6 = arith.constant 0 : index
    %7 = vector.load %arg5[%c0_5, %c0_6] : memref<2x32xf32, #tpu.memory_space<vmem>>, vector<2x32xf32>
    tpu.vector_store %arg5[%c0_5, %c0_6], %6 {strides = array<i32>} : memref<2x32xf32, #tpu.memory_space<vmem>>, vector<2x32xf32>,
    %c0_i32_7 = arith.constant 0 : i32
    %8 = arith.cmpi eq, %arg2, %c0_i32_7 : i32
    %9 = arith.extui %8 : i1 to i32
    %c0_i32_8 = arith.constant 0 : i32
    %10 = arith.cmpi ne, %9, %c0_i32_8 : i32
    scf.if %10 {
      %c0_9 = arith.constant 0 : index
      %c0_10 = arith.constant 0 : index
      %11 = vector.load %arg5[%c0_9, %c0_10] : memref<2x32xf32, #tpu.memory_space<vmem>>, vector<2x32xf32>
      %cst_11 = arith.constant 1.250000e-01 : f32
      %12 = vector.broadcast %cst_11 : f32 to vector<2x32xf32>
      %13 = arith.mulf %11, %12 : vector<2x32xf32>
      %c0_12 = arith.constant 0 : index
      %c0_13 = arith.constant 0 : index
      %14 = vector.load %arg4[%c0_12, %c0_13] : memref<2x32xf32, #tpu.memory_space<vmem>>, vector<2x32xf32>
      tpu.vector_store %arg4[%c0_12, %c0_13], %13 {strides = array<i32>} : memref<2x32xf32, #tpu.memory_space<vmem>>, vector<2x32xf32>,
    } else {
    }
    return
  }
  func.func @transform_0(%arg0: i32, %arg1: i32, %arg2: i32) -> (i32, i32, i32) {
    %c0_i32 = arith.constant 0 : i32
    return %arg0, %arg2, %arg1 : i32, i32, i32
  }
  func.func @transform_1(%arg0: i32, %arg1: i32, %arg2: i32) -> (i32, i32) {
    %c0_i32 = arith.constant 0 : i32
    return %arg0, %arg1 : i32, i32
  }
}

</mosaic_0001>

<bundles_post_ra>
// kernel: tpu_custom_call.1
= control target key start
LH: loop header
LB: loop body
LE: loop exit
PB: predicated region body
PF: predicated region fallthrough
CT: control target
= control target key end

     0   :  { %6 = vsyncpa [#allocation4], 0  ;;  %s161_s0 = inlined_call_operand.hbm [shape: f32[2,8,32], index: 0, kind: input, shape index: {}]   ;;  %s162_s1 = inlined_call_operand.hbm [shape: f32[2,32], index: 1, kind: output, shape index: {}]  }
   0x1   :  { %7 = vsyncpa [#allocation5], 0  ;;  %s12_s8 = sshll.u32 %s161_s0, 4  ;;  %s137_s9 = smov [#allocation3]   ;;  %s13_s8 = int_to_ptr.hbm [resolvable:$true] %s12_s8 }
   0x2   :  { %s14_s10 = sshll.u32 %s137_s9, 4  ;;  %s138_s11 = smov 128   ;;  %s15_s10 = int_to_ptr.vmem [resolvable:$true] %s14_s10 }
   0x3   :  { %s139_s12 = smov 8  }
   0x4   :  { %20 = dma.hbm_to_vmem [thread:$0]  %s13_s8, 256, %s15_s10, [#allocation4], %s138_s11, %s138_s11, %s139_s12  }
   0x5   :  { %133 = dma.done.wait [#allocation4], 256  }
   0x6   :  { %134 = vsyncadd [#allocation4], 4294967040  ;;  %vm29_vm0 = vcmask 254976   ;;  %v140_v0 = vmov 0.0   ;;  %vm34_vm1 = vcmask 261120   ;;  %v32_v1 = vld [vmem:[#allocation3] sm:$0xff] }
   0x7   :  { %30 = vst.msk [vmem:[#allocation2] sm:$0x3] %vm29_vm0, %v140_v0  ;;  %v33_v2 = vld [vmem:[#allocation3 + $0x8] sm:$0xff]  ;;  %v35_v3 = vsel %vm34_vm1, %v32_v1, 0.0  ;;  %vm51_vm2 = vcmask 1041409   ;;  %s141_s0 = smov [#allocation6]  }
   0x8   :  { %v42_v4 = vsel %vm34_vm1, %v33_v2, 0.0  ;;  %v36_v5 = vrot.slane %v35_v3, 4  ;;  %s68_s13 = sshll.u32 %s141_s0, 4  ;;  %s70_s16 = sshll.u32 %s162_s1, 4  ;;  %s69_s13 = int_to_ptr.vmem [resolvable:$true] %s68_s13  ;;  %s71_s16 = int_to_ptr.hbm [resolvable:$true] %s70_s16 }
   0x9   :  { %v43_v6 = vrot.slane %v42_v4, 4 }
   0xa   :  { %v37_v7 = vadd.f32 %v36_v5, %v35_v3 }
   0xb   :  { %v44_v8 = vadd.f32 %v43_v6, %v42_v4 }
   0xc   :  { %v38_v9 = vrot.slane %v37_v7, 2 }
   0xd   :  { %v45_v10 = vrot.slane %v44_v8, 2 }
   0xe   :  { %v39_v11 = vadd.f32 %v38_v9, %v37_v7  ;;  %v31_v15 = vld [vmem:[#allocation2] sm:$0x3] }
   0xf   :  { %v46_v12 = vadd.f32 %v45_v10, %v44_v8 }
  0x10   :  { %v40_v13 = vrot.slane %v39_v11, 1 }
  0x11   :  { %v47_v14 = vrot.slane %v46_v12, 1 }
  0x12   :  { %v41_v16 = vadd.f32 %v40_v13, %v39_v11 }
  0x13   :  { %v48_v17 = vadd.f32 %v47_v14, %v46_v12 }
  0x15   :  { %v52_v18 = vsel %vm51_vm2, %v48_v17, %v41_v16 }
  0x16   :  { %v54_v19 = vadd.f32 %v52_v18, %v31_v15 }
  0x18   :  { %56 = vst.msk [vmem:[#allocation2] sm:$0x3] %vm29_vm0, %v54_v19 }
  0x1f   :  { %v60_v20 = vld [vmem:[#allocation2] sm:$0x3] }
  0x20   :  { %v61_v21 = vmul.f32 0.125, %v60_v20 }
  0x22   :  { %62 = vst.msk [vmem:[#allocation6] sm:$0x3] %vm29_vm0, %v61_v21 }
  0x23   :  { %73 = dma.vmem_to_hbm [thread:$0]  %s69_s13, 32, %s71_s16, [#allocation5]  }
  0x24   :  { %135 = dma.done.wait [#allocation5], 32  }
  0x25   :  { %136 = vsyncadd [#allocation5], 4294967264 }
  0x26   :  { %78 = vsyncpa [#allocation4], 1 }
  0x27   :  { %79 = vsyncpa [#allocation5], 1 }

</bundles_post_ra>
